<compile_context>
chip_gen: v7x
topology: tpu7x:2x2x1
jax: 0.10.0
libtpu: 0.0.40
codegen_flags: <defaults>
</compile_context>

<pallas_src>
import jax
import jax.numpy as jnp
from jax.experimental import pallas as pl
from jax.experimental.pallas import tpu as pltpu

MARGIN = 15.0


def _round_up(x: int, m: int) -> int:
    return ((x + m - 1) // m) * m


def _mrr_loss_kernel(scores_ref, out_ref, acc_ref):
    """scores_ref: (num_neg+1, lane_tile) tile (native dtype);
    out_ref: (1, 1, 1) per-chunk partial sum (f32);
    acc_ref: (num_neg, lane_tile) f32 VMEM accumulator, persistent within a chunk."""
    t = pl.program_id(1)  # reduction axis (last grid axis, "arbitrary")

    @pl.when(t == 0)
    def _init():
        acc_ref[...] = jnp.zeros_like(acc_ref)

    tile = scores_ref[...].astype(jnp.float32)          # one widening cast per tile
    pos = tile[0:1, :]                                   # (1, lane_tile), sublane-broadcast
    neg = tile[1:, :]                                    # (num_neg, lane_tile)
    acc_ref[...] += jnp.maximum(neg - pos + MARGIN, 0.0)  # pure VPU; no per-step reduce

    @pl.when(t == pl.num_programs(1) - 1)
    def _finalize():
        # Single cross-lane/sublane reduction + scalar store per chunk (epilogue only).
        out_ref[...] = jnp.sum(acc_ref[...]).reshape(1, 1, 1)


def mrr_loss(res: jax.Array, num_neg_samples: int, *,
             lane_tile: int = 2048, n_chunks: int = 2) -> jax.Array:
    """Pallas implementation of MRRLoss.forward. Returns a scalar float32."""
    k = int(num_neg_samples)
    kp1 = k + 1
    scores = res.reshape(-1, kp1)              # (N, k+1) in the model's native dtype
    n_groups = scores.shape[0]
    in_dtype = scores.dtype

    # Lane-dense layout: groups along the last (lane) axis. Layout plumbing, not compute.
    scores_t = scores.T                        # (k+1, N)

    # Tile / grid sizing. lane_tile must be a multiple of 128; shrink for tiny inputs.
    lane_tile = max(128, min(_round_up(lane_tile, 128), _round_up(n_groups, 128)))
    n_tiles = pl.cdiv(n_groups, lane_tile)
    n_chunks = max(1, min(n_chunks, n_tiles))          # parallel chunks (helps v7x 2-TC)
    tiles_per_chunk = pl.cdiv(n_tiles, n_chunks)
    n_padded = n_chunks * tiles_per_chunk * lane_tile

    pad = n_padded - n_groups
    if pad:
        # Sentinel columns: pos = huge, neg = 0  ->  relu(0 - huge + 15) == 0 exactly.
        if jnp.issubdtype(in_dtype, jnp.floating):
            big = float(jnp.finfo(in_dtype).max) / 4.0
        else:
            big = float(2 ** 30)
        pad_cols = jnp.concatenate(
            [jnp.full((1, pad), big, dtype=in_dtype),
             jnp.zeros((k, pad), dtype=in_dtype)],
            axis=0,
        )
        scores_t = jnp.concatenate([scores_t, pad_cols], axis=1)

    partials = pl.pallas_call(
        _mrr_loss_kernel,
        out_shape=jax.ShapeDtypeStruct((n_chunks, 1, 1), jnp.float32),
        grid_spec=pltpu.PrefetchScalarGridSpec(
            num_scalar_prefetch=0,
            grid=(n_chunks, tiles_per_chunk),
            in_specs=[
                # (k+1, lane_tile): second-minor dim spans the full k+1 axis of the array,
                # lane dim is a multiple of 128 -> lane-dense, unmasked loads.
                pl.BlockSpec((kp1, lane_tile),
                             lambda c, t: (0, c * tiles_per_chunk + t)),
            ],
            # One (1,1,1) output slot per parallel chunk; last two dims span the array.
            out_specs=pl.BlockSpec((1, 1, 1), lambda c, t: (c, 0, 0)),
            scratch_shapes=[pltpu.VMEM((k, lane_tile), jnp.float32)],
        ),
        compiler_params=pltpu.CompilerParams(
            dimension_semantics=("parallel", "arbitrary"),
            vmem_limit_bytes=32 << 20,
        ),
    )(scores_t)
    return jnp.sum(partials)


def mrr_loss_ref(res: jax.Array, num_neg_samples: int) -> jax.Array:
    """Pure-JAX reference mirroring torch.nn.MarginRankingLoss(15, reduction='sum')."""
    scores = res.reshape(-1, num_neg_samples + 1).astype(jnp.float32)
    pos = scores[:, 0:1]
    neg = scores[:, 1:]
    return jnp.sum(jnp.maximum(neg - pos + MARGIN, 0.0))


if __name__ == "__main__":
    num_neg_samples = 7          # -> num_neg + 1 = 8 scores per (pos, negs) group
    n_groups = 1000              # small demo; deliberately NOT a multiple of the lane tile
    total = n_groups * (num_neg_samples + 1)

    key = jax.random.PRNGKey(0)
    # `res` is the flat score tensor the model would produce (any shape; viewed as (-1, k+1)).
    res = jax.random.normal(key, (total,), dtype=jnp.float32) * 5.0

    # Small lane tile + 2 chunks so the demo exercises multi-tile accumulation,
    # the parallel chunk split, and the sentinel tail padding.
    loss = mrr_loss(res, num_neg_samples, lane_tile=256, n_chunks=2)
    loss = jax.block_until_ready(loss)

    ref = mrr_loss_ref(res, num_neg_samples)
    assert jnp.allclose(loss, ref, rtol=1e-5, atol=1e-3), (loss, ref)

    print("KERNEL_OK")
</pallas_src>

<mosaic_0001>
module attributes {stable_mosaic.version = 11 : i64} {
  func.func @_mrr_loss_kernel(%arg0: i32, %arg1: i32, %arg2: memref<8x256xf32, #tpu.memory_space<vmem>>, %arg3: memref<1x1x1xf32, #tpu.memory_space<vmem>>, %arg4: memref<7x256xf32, #tpu.memory_space<vmem>>) attributes {dimension_semantics = [#tpu.dimension_semantics<parallel>, #tpu.dimension_semantics<arbitrary>], iteration_bounds = array<i64: 2, 2>, scalar_prefetch = 0 : i64, scratch_operands = 1 : i64, tpu.core_type = #tpu.core_type<tc>, window_params = [{transform_indices = @transform_0, window_bounds = array<i64: 8, 256>}, {transform_indices = @transform_1, window_bounds = array<i64: 1, 1, 1>}]} {
    %c0_i32 = arith.constant 0 : i32
    %0 = arith.cmpi eq, %arg1, %c0_i32 : i32
    %1 = arith.extui %0 : i1 to i32
    %c0_i32_0 = arith.constant 0 : i32
    %2 = arith.cmpi ne, %1, %c0_i32_0 : i32
    scf.if %2 {
      %cst_8 = arith.constant 0.000000e+00 : f32
      %18 = vector.broadcast %cst_8 : f32 to vector<7x256xf32>
      %c0_9 = arith.constant 0 : index
      %c0_10 = arith.constant 0 : index
      %19 = vector.load %arg4[%c0_9, %c0_10] : memref<7x256xf32, #tpu.memory_space<vmem>>, vector<7x256xf32>
      tpu.vector_store %arg4[%c0_9, %c0_10], %18 {strides = array<i32>} : memref<7x256xf32, #tpu.memory_space<vmem>>, vector<7x256xf32>,
    } else {
    }
    %c0 = arith.constant 0 : index
    %c0_1 = arith.constant 0 : index
    %3 = vector.load %arg2[%c0, %c0_1] : memref<8x256xf32, #tpu.memory_space<vmem>>, vector<8x256xf32>
    %4 = vector.extract_strided_slice %3 {offsets = [0, 0], sizes = [1, 256], strides = [1, 1]} : vector<8x256xf32> to vector<1x256xf32>
    %5 = vector.extract_strided_slice %3 {offsets = [1, 0], sizes = [7, 256], strides = [1, 1]} : vector<8x256xf32> to vector<7x256xf32>
    %c0_2 = arith.constant 0 : index
    %c0_3 = arith.constant 0 : index
    %6 = vector.load %arg4[%c0_2, %c0_3] : memref<7x256xf32, #tpu.memory_space<vmem>>, vector<7x256xf32>
    %7 = vector.broadcast %4 : vector<1x256xf32> to vector<7x256xf32>
    %8 = arith.subf %5, %7 : vector<7x256xf32>
    %cst = arith.constant 1.500000e+01 : f32
    %9 = vector.broadcast %cst : f32 to vector<7x256xf32>
    %10 = arith.addf %8, %9 : vector<7x256xf32>
    %cst_4 = arith.constant 0.000000e+00 : f32
    %11 = vector.broadcast %cst_4 : f32 to vector<7x256xf32>
    %12 = arith.maximumf %10, %11 : vector<7x256xf32>
    %13 = arith.addf %6, %12 : vector<7x256xf32>
    %c0_5 = arith.constant 0 : index
    %c0_6 = arith.constant 0 : index
    %14 = vector.load %arg4[%c0_5, %c0_6] : memref<7x256xf32, #tpu.memory_space<vmem>>, vector<7x256xf32>
    tpu.vector_store %arg4[%c0_5, %c0_6], %13 {strides = array<i32>} : memref<7x256xf32, #tpu.memory_space<vmem>>, vector<7x256xf32>,
    %c1_i32 = arith.constant 1 : i32
    %15 = arith.cmpi eq, %arg1, %c1_i32 : i32
    %16 = arith.extui %15 : i1 to i32
    %c0_i32_7 = arith.constant 0 : i32
    %17 = arith.cmpi ne, %16, %c0_i32_7 : i32
    scf.if %17 {
      %c0_8 = arith.constant 0 : index
      %c0_9 = arith.constant 0 : index
      %18 = vector.load %arg4[%c0_8, %c0_9] : memref<7x256xf32, #tpu.memory_space<vmem>>, vector<7x256xf32>
      %19 = vector.shape_cast %18 : vector<7x256xf32> to vector<1x7x256xf32>
      %cst_10 = arith.constant dense<0.000000e+00> : vector<1xf32>
      %20 = vector.multi_reduction <add>, %19, %cst_10 [1, 2] : vector<1x7x256xf32> to vector<1xf32>
      %21 = vector.shape_cast %20 : vector<1xf32> to vector<1x1x1xf32>
      %22 = vector.extract %21[0, 0, 0] : f32 from vector<1x1x1xf32>
      %23 = vector.broadcast %22 : f32 to vector<1x1x1xf32>
      %c0_11 = arith.constant 0 : index
      %c0_12 = arith.constant 0 : index
      %c0_13 = arith.constant 0 : index
      %24 = vector.load %arg3[%c0_11, %c0_12, %c0_13] : memref<1x1x1xf32, #tpu.memory_space<vmem>>, vector<1x1x1xf32>
      tpu.vector_store %arg3[%c0_11, %c0_12, %c0_13], %23 {strides = array<i32>} : memref<1x1x1xf32, #tpu.memory_space<vmem>>, vector<1x1x1xf32>,
    } else {
    }
    return
  }
  func.func @transform_0(%arg0: i32, %arg1: i32) -> (i32, i32) {
    %c2_i32 = arith.constant 2 : i32
    %0 = arith.muli %arg0, %c2_i32 : i32
    %1 = arith.addi %0, %arg1 : i32
    %c0_i32 = arith.constant 0 : i32
    %c0_i32_0 = arith.constant 0 : i32
    return %c0_i32, %1 : i32, i32
  }
  func.func @transform_1(%arg0: i32, %arg1: i32) -> (i32, i32, i32) {
    %c0_i32 = arith.constant 0 : i32
    %c0_i32_0 = arith.constant 0 : i32
    %c0_i32_1 = arith.constant 0 : i32
    return %arg0, %c0_i32, %c0_i32_0 : i32, i32, i32
  }
}

</mosaic_0001>

<bundles_post_ra>
// kernel: tpu_custom_call.1
= control target key start
LH: loop header
LB: loop body
LE: loop exit
PB: predicated region body
PF: predicated region fallthrough
CT: control target
= control target key end

     0   :  { %6 = vsyncpa [#allocation4], 0  ;;  %s637_s0 = inlined_call_operand.hbm [shape: f32[8,1024], index: 0, kind: input, shape index: {}]   ;;  %s638_s1 = inlined_call_operand.vmem [shape: f32[2,1,1], index: 1, kind: output, shape index: {}]  }
   0x1   :  { %8 = vsyncpa [#allocation4 + $0x1], 0  ;;  %s481_s6 = smov 0   ;;  %s483_s7 = smov 0  }
   0x2   :  { %s485_s8 = smov 0   ;;  %s487_s9 = smov 0  }
   0x3   :  { %s489_s10 = smov 0   ;;  %s491_s11 = smov 0  }
   0x4   :  { %s493_s12 = smov 0   ;;  %s495_s13 = smov 0  }
   0x5 LB: > { %s280_s14 = sadd.s32 4294967295, %s467_s13   ;;  %s23_s15 = sadd.s32 1, %s459_s11  ;;  %s467_s13 = sphi %s495_s13, %s14_s13   ;;  %s463_s12 = sphi %s493_s12, %s650_s12   ;;  %s459_s11 = sphi %s491_s11, %s649_s11   ;;  %s455_s10 = sphi %s489_s10, %s648_s10   ;;  %s451_s9 = sphi %s487_s9, %s647_s9   ;;  %s447_s8 = sphi %s485_s8, %s646_s8   ;;  %s443_s7 = sphi %s483_s7, %s645_s7   ;;  %s439_s6 = sphi %s481_s6, %s644_s6  }
   0x6   : > { %p24_p0 = scmp.ge.s32.totalorder %s23_s15, 2  ;;  %s26_s16 = sadd.s32 1, %s463_s12 }
   0x7   : > { %s282_s17 = sshll.u32 %s463_s12, 1  ;;  %s37_s18 = sadd.s32 1, %s447_s8 }
   0x8   : > { %s652_s15 = smov (%p24_p0, %s23_s15), 0  ;;  %s654_s16 = smov (!%p24_p0, %s26_s16), %s463_s12 }
   0x9   : > { %s31_s19 = sadd.s32 %s459_s11, %s282_s17  ;;  %p44_p1 = scmp.ne.s32.totalorder %s447_s8, %s443_s7 }
   0xa   : > { %p28_p2 = scmp.ge.s32.totalorder %s654_s16, 2  ;;  %p45_p3 = scmp.eq.s32.totalorder %s467_s13, 0 }
   0xb   : > { %p50_p4 = scmp.ne.s32.totalorder %s443_s7, %s439_s6  ;;  %p51_p5 = scmp.eq.s32.totalorder %s280_s14, 0 }
   0xc   : > { %s656_s16 = smov (%p28_p2, %s654_s16), 0  ;;  %p534_p6 = por %p45_p3, %p44_p1 }
   0xd   : > { %p538_p7 = por %p51_p5, %p50_p4  ;;  %s283_s22 = sshll.u32 %s656_s16, 1 }
   0xe   : > { %s33_s23 = sadd.s32 %s283_s22, %s652_s15  ;;  %p305_p8 = scmp.lt.s32.totalorder %s467_s13, 4 }
   0xf   : > { %s34_s24 = ssub.s32 %s31_s19, %s33_s23  ;;  %s100_s25 = sand.u32 1, %s447_s8  }
  0x10   : > { %p35_p9 = scmp.eq.s32.totalorder %s34_s24, 0  ;;  %s286_s26 = sshll.u32 %s100_s25, 4 }
  0x11   : > { %s296_s27 = sshll.u32 %s31_s19, 8  ;;  %s104_s3 = scalar_lea.vmem [#allocation3], %s286_s26 }
  0x12   : > { %s547_s28 = scalar_select %p35_p9, %s447_s8, %s37_s18  }
  0x13   : > { %s552_s2 = scalar_lea.hbm %s637_s0, %s296_s27  ;;  %s114_s4 = sshll.u32 %s104_s3, 4  ;;  %s560_s4 = int_to_ptr.vmem [resolvable:$true] %s114_s4 }
  0x14   : > { %p556_p10 = pnand %p305_p8, %p534_p6  ;;  %s101_s6 = scalar_lea.sflag [#allocation4], %s100_s25 }
  0x15   : > { %s371_s14 = scalar_lea.hbm %s552_s2, 256  ;;  %s376_s19 = scalar_lea.hbm %s637_s0, 1024 }
  0x16   : > { %p372_p13 = scmp.ne.s32.totalorder %s552_s2, %s371_s14  ;;  %p373_p0 = pneg %p556_p10 }
  0x17   : > { %p377_p3 = scmp.lt.u32.totalorder %s552_s2, %s637_s0  ;;  %p378_p4 = scmp.lt.u32.totalorder %s376_s19, %s371_s14 }
  0x18   : > { %p374_p1 = pnand %p373_p0, %p372_p13  ;;  %p380_p6 = scmp.lt.u32.totalorder %s371_s14, %s552_s2 }
  0x19   : > { %p379_p5 = por %p378_p4, %p377_p3 }
  0x1a   : > { %p375_p2 = pneg %p374_p1 }
  0x1b   : > { %p381_p8 = por %p380_p6, %p379_p5 }
  0x1d   : > { %p382_p9 = pnand %p381_p8, %p375_p2 }
  0x1f   : > { %385 = shalt.err (!%p382_p9)
}
  0x20   : > { %s386_s23 = scalar_lea.vmem %s560_s4, 256  ;;  %s469_s24 = smov [#allocation3]  }
  0x21   : > { %p387_p13 = scmp.ne.s32.totalorder %s560_s4, %s386_s23  ;;  %s391_s25 = sshll.u32 %s469_s24, 4  ;;  %s392_s25 = int_to_ptr.vmem [resolvable:$false] %s391_s25 }
  0x22   : > { %s393_s26 = scalar_lea.vmem %s392_s25, 512  ;;  %p394_p12 = scmp.lt.s32.totalorder %s560_s4, %s392_s25 }
  0x23   : > { %p389_p1 = pnand %p387_p13, %p373_p0  ;;  %p395_p3 = scmp.lt.s32.totalorder %s393_s26, %s386_s23 }
  0x25   : > { %p390_p11 = pneg %p389_p1  ;;  %p396_p4 = por %p395_p3, %p394_p12 }
  0x27   : > { %p397_p5 = pnand %p396_p4, %p390_p11 }
  0x29   : > { %400 = shalt.err (!%p397_p5)
}
  0x2a   : > { %304 = dma.hbm_to_vmem [thread:$0]  (!%p556_p10), %s552_s2, 256, %s560_s4, %s101_s6  }
  0x2b   : > { %p642_p2 = scmp.lt.s32.totalorder %s467_s13, 5  ;;  %p643_p6 = scmp.ge.s32.totalorder %s467_s13, 1 }
  0x2d   : > { %p120_p0 = pnand %p643_p6, %p642_p2 }
  0x2e   : > { %s125_s27 = sand.u32 (!%p120_p0), 1, %s443_s7  }
  0x2f   : > { %123 = sbr.rel (%p120_p0) target bundleno = 299 (0x12b), region = 24  ;;  %s291_s29 = sshll.u32 (!%p120_p0), %s125_s27, 4 }
  0x30   : > { %s126_s30 = scalar_lea.sflag (!%p120_p0), [#allocation4], %s125_s27  ;;  %s129_s3 = scalar_lea.vmem (!%p120_p0), [#allocation3], %s291_s29 }
  0x36   : > { %434 = dma.done.wait (%p538_p7), %s126_s30, 256  }
  0x37   : > { %436 = vsyncadd (%p538_p7), %s126_s30, 4294967040  ;;  %p149_p11 = scmp.lt.s32.totalorder %s455_s10, 1  ;;  %p292_p10 = scmp.ne.s32.totalorder %s451_s9, 0 }
  0x38   : > { %v470_v0 = vmov (!%p292_p10), 0.0  }
  0x39   : > { %s658_s10 = smov (!%p149_p11, %s455_s10), 1  ;;  %155 = sbr.rel (%p292_p10) target bundleno = 64 (0x40), region = 32 }
  0x3a   : > { %s151_s5 = scalar_lea.vmem %s638_s1, %s658_s10  ;;  %156 = vst [vmem:[#allocation2] sm:$0x7f] (!%p292_p10), %v470_v0  ;;  %157 = vst [vmem:[#allocation2 + $0x8] sm:$0x7f] (!%p292_p10), %v470_v0 }
  0x40 PF: > { %v162_v1 = vlaneseq  ;;  %v158_v3 = vld [vmem:[%s129_s3] sm:$0xff]  ;;  %v159_v4 = vld [vmem:[%s129_s3 + $0x8] sm:$0xff]  ;;  %p293_p7 = scmp.ne.s32.totalorder %s451_s9, 1 }
  0x41   : > { %v160_v14 = vld [vmem:[#allocation2] sm:$0x7f]  ;;  %v161_v15 = vld [vmem:[#allocation2 + $0x8] sm:$0x7f]  ;;  %vm192_vm0 = vcmask (!%p293_p7), 1046528   ;;  %vm206_vm1 = vcmask (!%p293_p7), 0  }
  0x42   : > { %v163_v2 = vshrl.u32 %v162_v1, 7 }
  0x44   : > { %v164_v5 = vsub.s32 0, %v163_v2 }
  0x46   : > { %v165_v6 = vrot.slane %v158_v3, %v164_v5  ;;  %v169_v7 = vrot.slane %v159_v4, %v164_v5 }
  0x48   : > { %v170_v8 = vsub.f32 %v158_v3, %v165_v6  ;;  %v171_v9 = vsub.f32 %v159_v4, %v169_v7 }
  0x4a   : > { %v172_v10 = vadd.f32 15.0, %v170_v8  ;;  %v173_v11 = vadd.f32 15.0, %v171_v9 }
  0x4c   : > { %v174_v12 = vmax.f32 %v172_v10, 0.0  ;;  %v175_v13 = vmax.f32 %v173_v11, 0.0  ;;  %189 = sbr.rel (%p293_p7) target bundleno = 299 (0x12b), region = 36 }
  0x4e   : > { %v178_v16 = vrot.slane %v174_v12, 1  ;;  %v179_v17 = vrot.slane %v175_v13, 1 }
  0x50   : > { %v182_v18 = vadd.f32 %v178_v16, %v160_v14  ;;  %v183_v19 = vadd.f32 %v179_v17, %v161_v15 }
  0x52   : > { %184 = vst [vmem:[#allocation2] sm:$0x7f] %v182_v18  ;;  %185 = vst [vmem:[#allocation2 + $0x8] sm:$0x7f] %v183_v19 }
  0x59   : > { %v190_v20 = vld [vmem:[#allocation2] sm:$0x7f]  ;;  %v191_v21 = vld [vmem:[#allocation2 + $0x8] sm:$0x7f] }
  0x5a   : > { %v193_v22 = vsel %vm192_vm0, %v190_v20, 0.0  ;;  %v194_v23 = vsel %vm192_vm0, %v191_v21, 0.0 }
  0x5b   : > { %v195_v24 = vadd.f32 %v194_v23, %v193_v22 }
  0x5d   : > { %196 = vadd.xlane.f32.xlu0 %v195_v24 }
  0xea   : > { %v197_v25 = vpop.xlane.xlu0 %196 }
  0xeb   : > { %v198_v26 = vrot.slane %v197_v25, 4 }
  0xed   : > { %v199_v27 = vadd.f32 %v198_v26, %v197_v25 }
  0xef   : > { %v200_v28 = vrot.slane %v199_v27, 2 }
  0xf1   : > { %v201_v29 = vadd.f32 %v200_v28, %v199_v27 }
  0xf3   : > { %v202_v30 = vrot.slane %v201_v29, 1 }
  0xf5   : > { %v203_v31 = vadd.f32 %v202_v30, %v201_v29 }
  0xf7   : > { %297 = vpush %v203_v31 }
 0x128   : > { %s298_s21 = spop %297 }
 0x129   : > { %v205_v32 = vstv %s298_s21 }
 0x12a   : > { %207 = vst.msk [vmem:[%s151_s5] sm:$0x1] %vm206_vm1, %v205_v32 }
 0x12b PF: > { %s14_s13 = sadd.s32 1, %s467_s13   ;;  %s644_s6 = smov %s443_s7 }
 0x12c   : > { %p11_p12 = scmp.ge.s32.totalorder %s14_s13, 6   ;;  %s645_s7 = smov %s447_s8 }
 0x12d   : > { %s646_s8 = smov %s547_s28  ;;  %s647_s9 = smov %s459_s11 }
 0x12e   : > { %s648_s10 = smov %s463_s12  ;;  %s649_s11 = smov %s652_s15 }
 0x12f   : > { %s650_s12 = smov %s656_s16  ;;  %13 = sbr.rel (!%p11_p12) target bundleno = 5 (0x5), region = 72 }
 0x136   :  { %225 = vsyncpa [#allocation4], 1 }
 0x137   :  { %227 = vsyncpa [#allocation4 + $0x1], 1 }

</bundles_post_ra>
